<compile_context>
chip_gen: v5e
topology: v5e:2x2
jax: 0.10.0
libtpu: 0.0.40
codegen_flags: <defaults>
</compile_context>

<pallas_src>
import jax
import jax.numpy as jnp
from jax.experimental import pallas as pl
from jax.experimental.pallas import tpu as pltpu

MOVIES_TOTAL = 250   # MovieLens-style (NOT a multiple of 128) -> padded to 256
H1 = 25
H2 = 15
LANE = 128


def _round_up(n, m):
    return -(-n // m) * m


# --------------------------------------------------------------------------- #
# Kernel
# --------------------------------------------------------------------------- #
def sae_kernel(x_ref,
               w1_ref, b1_ref,
               w2_ref, b2_ref,
               w3_ref, b3_ref,
               w4_ref, b4_ref,
               o_ref):
    # Layer 1: bf16 x @ bf16 W1 -> f32 accumulate on the MXU.  No (tb, Mp) f32
    # materialization of x (saves VPU cast work, vregs and VMEM traffic).
    h = jnp.dot(x_ref[...], w1_ref[...],
                preferred_element_type=jnp.float32)                  # (tb, 25)
    h = jax.nn.sigmoid(h + b1_ref[...])

    # Layers 2/3 are tiny (25/15 wide) -> keep them in f32; cost is negligible.
    h = jax.nn.sigmoid(
        jnp.dot(h, w2_ref[...], preferred_element_type=jnp.float32)  # (tb, 15)
        + b2_ref[...])
    h = jax.nn.sigmoid(
        jnp.dot(h, w3_ref[...], preferred_element_type=jnp.float32)  # (tb, 25)
        + b3_ref[...])

    # Layer 4: cast the small (tb, 25) activation to the weight dtype so the big
    # matmul is a native single-pass bf16 MXU op; accumulate in f32.
    out = jnp.dot(h.astype(w4_ref.dtype), w4_ref[...],
                  preferred_element_type=jnp.float32)                # (tb, Mp)
    o_ref[...] = (out + b4_ref[...]).astype(o_ref.dtype)


# --------------------------------------------------------------------------- #
# Parameter prep (run ONCE, reuse across forward calls)
# --------------------------------------------------------------------------- #
def prepare_params(params, movies_total, io_dtype=jnp.bfloat16):
    """Pad the feature axis to a lane multiple and cast the two large weights to
    the I/O dtype.  Do this once and reuse; it keeps param prep off the per-call
    HBM path."""
    m = int(movies_total)
    mp = _round_up(m, LANE)
    prepared = {
        "w1": jnp.pad(params["w1"], ((0, mp - m), (0, 0))).astype(io_dtype),  # (Mp, 25)
        "b1": params["b1"].astype(jnp.float32),
        "w2": params["w2"].astype(jnp.float32),
        "b2": params["b2"].astype(jnp.float32),
        "w3": params["w3"].astype(jnp.float32),
        "b3": params["b3"].astype(jnp.float32),
        "w4": jnp.pad(params["w4"], ((0, 0), (0, mp - m))).astype(io_dtype),  # (25, Mp)
        "b4": jnp.pad(params["b4"], ((0, 0), (0, mp - m))).astype(jnp.float32),
        "movies_total": m,
    }
    return prepared


def _choose_batch_tile(B, batch_tile):
    if batch_tile is None:
        batch_tile = 2048          # ~1 MiB bf16 x-tile at Mp=256; amortizes per-step overhead
    tb = _round_up(min(int(batch_tile), max(int(B), 1)), 16)   # 16: bf16 sublane packing
    # Guarantee >= 2 grid steps whenever possible so the "parallel" batch axis
    # can shard across both v7x TensorCores and I/O pipelines against compute.
    if B >= 32:
        tb = min(tb, _round_up(pl.cdiv(B, 2), 16))
    return tb


# --------------------------------------------------------------------------- #
# Forward wrapper
# --------------------------------------------------------------------------- #
def sae_forward(x, prepared, *, batch_tile=None, return_padded=False):
    """x: (B, movies_total) (or already (Bp, Mp) in the I/O dtype for the
    zero-overhead padded path).  prepared: output of prepare_params."""
    w1, b1 = prepared["w1"], prepared["b1"]
    w2, b2 = prepared["w2"], prepared["b2"]
    w3, b3 = prepared["w3"], prepared["b3"]
    w4, b4 = prepared["w4"], prepared["b4"]
    M = prepared["movies_total"]
    Mp = w1.shape[0]
    io_dtype = w1.dtype
    io_bytes = jnp.dtype(io_dtype).itemsize

    B = x.shape[0]
    tb = _choose_batch_tile(B, batch_tile)
    Bp = _round_up(B, tb)

    # Pad/cast the input only if needed.  When the surrounding model keeps
    # activations padded + bf16 end-to-end this is a no-op; otherwise
    # allow_input_fusion lets XLA fuse this producer into the pallas_call
    # operand instead of a separate HBM round trip (run under jit).
    if x.shape != (Bp, Mp) or x.dtype != io_dtype:
        x_io = jnp.pad(x.astype(io_dtype),
                       ((0, Bp - x.shape[0]), (0, Mp - x.shape[1])))
    else:
        x_io = x

    # Weights/biases are tiny -> full-array blocks with a constant index_map,
    # so they are DMA'd once and not re-fetched per grid step.
    # (pl.Buffered(1) on these would halve ~100 KB of param double-buffer VMEM;
    #  left at the default for robustness — negligible here.)
    def full_spec(shape):
        return pl.BlockSpec(shape, lambda i: (0,) * len(shape))

    grid = (Bp // tb,)

    param_arrays = (w1, b1, w2, b2, w3, b3, w4, b4)
    param_bytes = sum(int(a.size) * a.dtype.itemsize for a in param_arrays)

    # VMEM budget from actual footprint (no arbitrary floor), capped at 64 MiB
    # so the limit is valid on v7x's 64 MiB/TC as well as v5e/v6e.
    vmem_bytes = (2 * 2 * tb * Mp * io_bytes   # double-buffered x + out tiles
                  + 2 * param_bytes            # grid-invariant params (+ 2nd buffer)
                  + 2 * tb * Mp * 4            # f32 temporaries for the last layer
                  + (8 << 20))                 # compiler-internal scratch headroom
    vmem_bytes = int(min(vmem_bytes, 64 << 20))

    cost = pl.CostEstimate(
        flops=2 * Bp * (Mp * H1 + H1 * H2 + H2 * H1 + H1 * Mp),
        transcendentals=Bp * (2 * H1 + H2),
        bytes_accessed=2 * Bp * Mp * io_bytes + param_bytes,
    )

    grid_spec = pltpu.PrefetchScalarGridSpec(
        num_scalar_prefetch=0,
        grid=grid,
        in_specs=[
            pl.BlockSpec((tb, Mp), lambda i: (i, 0)),   # x : tiled over batch
            full_spec(w1.shape), full_spec(b1.shape),
            full_spec(w2.shape), full_spec(b2.shape),
            full_spec(w3.shape), full_spec(b3.shape),
            full_spec(w4.shape), full_spec(b4.shape),
        ],
        out_specs=pl.BlockSpec((tb, Mp), lambda i: (i, 0)),
    )

    out_padded = pl.pallas_call(
        sae_kernel,
        out_shape=jax.ShapeDtypeStruct((Bp, Mp), io_dtype),
        grid_spec=grid_spec,
        compiler_params=pltpu.CompilerParams(
            dimension_semantics=("parallel",),
            vmem_limit_bytes=vmem_bytes,
            allow_input_fusion=[True] + [False] * 8),
        cost_estimate=cost,
    )(x_io, w1, b1, w2, b2, w3, b3, w4, b4)

    if return_padded:
        return out_padded
    return out_padded[:B, :M]


# --------------------------------------------------------------------------- #
# Init + reference
# --------------------------------------------------------------------------- #
def init_params(key, movies_total=MOVIES_TOTAL):
    """Deterministic init mimicking nn.Linear default (uniform +-1/sqrt(fan_in)).

    Weights stored transposed: shape (in, out).  Biases shape (1, out)."""
    dims = [(movies_total, H1), (H1, H2), (H2, H1), (H1, movies_total)]
    params = {}
    keys = jax.random.split(key, 2 * len(dims))
    for idx, (fan_in, fan_out) in enumerate(dims):
        bound = 1.0 / (fan_in ** 0.5)
        wk, bk = keys[2 * idx], keys[2 * idx + 1]
        params[f"w{idx+1}"] = jax.random.uniform(
            wk, (fan_in, fan_out), jnp.float32, minval=-bound, maxval=bound)
        params[f"b{idx+1}"] = jax.random.uniform(
            bk, (1, fan_out), jnp.float32, minval=-bound, maxval=bound)
    return params


def sae_reference(x, params, io_dtype=jnp.bfloat16):
    """Pure-JAX reference with the same bf16 quantization points as the kernel
    (x, w1, w4, and the layer-3 activation feeding fc4); math in f32."""
    def q(a):
        return a.astype(io_dtype).astype(jnp.float32)
    h = jax.nn.sigmoid(q(x) @ q(params["w1"]) + params["b1"])
    h = jax.nn.sigmoid(h @ params["w2"] + params["b2"])
    h = jax.nn.sigmoid(h @ params["w3"] + params["b3"])
    return q(h) @ q(params["w4"]) + params["b4"]


if __name__ == "__main__":
    key = jax.random.PRNGKey(0)
    pkey, xkey = jax.random.split(key)

    params = init_params(pkey)
    prepared = prepare_params(params, MOVIES_TOTAL)   # pad/cast ONCE, off the hot path

    B = 32  # batch of users; each row is that user's rating vector over all movies
    x = jax.random.uniform(xkey, (B, MOVIES_TOTAL), jnp.float32, minval=0.0, maxval=5.0)

    # Default tiling at B=32 gives tb=16 -> a 2-step "parallel" grid: exercises
    # the pipelined multi-step / megacore path even at demo shapes.  Jitting the
    # wrapper lets the input pad/cast fuse into the pallas_call operand.
    fwd = jax.jit(lambda xx: sae_forward(xx, prepared))
    out = jax.block_until_ready(fwd(x))

    ref = sae_reference(x, params)
    assert out.shape == (B, MOVIES_TOTAL)
    err = float(jnp.max(jnp.abs(out.astype(jnp.float32) - ref)))
    # tolerance bounded by bf16 quantization of x / w1 / w4 / output
    # (accumulation inside the kernel is f32)
    assert err < 5e-2, f"mismatch vs pure-JAX reference: max abs err {err}"

    print("KERNEL_OK")
</pallas_src>

<mosaic_0001>
module attributes {stable_mosaic.version = 11 : i64} {
  func.func @sae_kernel(%arg0: i32, %arg1: memref<16x256xbf16, #tpu.memory_space<vmem>>, %arg2: memref<256x25xbf16, #tpu.memory_space<vmem>>, %arg3: memref<1x25xf32, #tpu.memory_space<vmem>>, %arg4: memref<25x15xf32, #tpu.memory_space<vmem>>, %arg5: memref<1x15xf32, #tpu.memory_space<vmem>>, %arg6: memref<15x25xf32, #tpu.memory_space<vmem>>, %arg7: memref<1x25xf32, #tpu.memory_space<vmem>>, %arg8: memref<25x256xbf16, #tpu.memory_space<vmem>>, %arg9: memref<1x256xf32, #tpu.memory_space<vmem>>, %arg10: memref<16x256xbf16, #tpu.memory_space<vmem>>) attributes {dimension_semantics = [#tpu.dimension_semantics<parallel>], iteration_bounds = array<i64: 2>, scalar_prefetch = 0 : i64, scratch_operands = 0 : i64, tpu.core_type = #tpu.core_type<tc>, window_params = [{transform_indices = @transform_0, window_bounds = array<i64: 16, 256>}, {pipeline_mode = #tpu.pipeline_mode<synchronous>, transform_indices = @transform_1, window_bounds = array<i64: 256, 25>}, {pipeline_mode = #tpu.pipeline_mode<synchronous>, transform_indices = @transform_2, window_bounds = array<i64: 1, 25>}, {pipeline_mode = #tpu.pipeline_mode<synchronous>, transform_indices = @transform_3, window_bounds = array<i64: 25, 15>}, {pipeline_mode = #tpu.pipeline_mode<synchronous>, transform_indices = @transform_4, window_bounds = array<i64: 1, 15>}, {pipeline_mode = #tpu.pipeline_mode<synchronous>, transform_indices = @transform_5, window_bounds = array<i64: 15, 25>}, {pipeline_mode = #tpu.pipeline_mode<synchronous>, transform_indices = @transform_6, window_bounds = array<i64: 1, 25>}, {pipeline_mode = #tpu.pipeline_mode<synchronous>, transform_indices = @transform_7, window_bounds = array<i64: 25, 256>}, {pipeline_mode = #tpu.pipeline_mode<synchronous>, transform_indices = @transform_8, window_bounds = array<i64: 1, 256>}, {transform_indices = @transform_9, window_bounds = array<i64: 16, 256>}]} {
    %c0 = arith.constant 0 : index
    %c0_0 = arith.constant 0 : index
    %0 = vector.load %arg1[%c0, %c0_0] : memref<16x256xbf16, #tpu.memory_space<vmem>>, vector<16x256xbf16>
    %c0_1 = arith.constant 0 : index
    %c0_2 = arith.constant 0 : index
    %1 = vector.load %arg2[%c0_1, %c0_2] : memref<256x25xbf16, #tpu.memory_space<vmem>>, vector<256x25xbf16>
    %cst = arith.constant dense<0.000000e+00> : vector<16x25xf32>
    %2 = tpu.matmul %0, %1, %cst {dimension_numbers = #tpu.dot_dimension_numbers<[1], [0], [0], [1], [0, 0, 1, 1], [], []>} : vector<16x256xbf16>, vector<256x25xbf16>, vector<16x25xf32> -> vector<16x25xf32>
    %c0_3 = arith.constant 0 : index
    %c0_4 = arith.constant 0 : index
    %3 = vector.load %arg3[%c0_3, %c0_4] : memref<1x25xf32, #tpu.memory_space<vmem>>, vector<1x25xf32>
    %4 = vector.broadcast %3 : vector<1x25xf32> to vector<16x25xf32>
    %5 = arith.addf %2, %4 : vector<16x25xf32>
    %6 = arith.negf %5 : vector<16x25xf32>
    %7 = math.exp %6 : vector<16x25xf32>
    %cst_5 = arith.constant 1.000000e+00 : f32
    %8 = vector.broadcast %cst_5 : f32 to vector<16x25xf32>
    %9 = arith.addf %8, %7 : vector<16x25xf32>
    %10 = arith.divf %8, %9 : vector<16x25xf32>
    %c0_6 = arith.constant 0 : index
    %c0_7 = arith.constant 0 : index
    %11 = vector.load %arg4[%c0_6, %c0_7] : memref<25x15xf32, #tpu.memory_space<vmem>>, vector<25x15xf32>
    %cst_8 = arith.constant dense<0.000000e+00> : vector<16x15xf32>
    %12 = tpu.matmul %10, %11, %cst_8 {dimension_numbers = #tpu.dot_dimension_numbers<[1], [0], [0], [1], [0, 0, 1, 1], [], []>} : vector<16x25xf32>, vector<25x15xf32>, vector<16x15xf32> -> vector<16x15xf32>
    %c0_9 = arith.constant 0 : index
    %c0_10 = arith.constant 0 : index
    %13 = vector.load %arg5[%c0_9, %c0_10] : memref<1x15xf32, #tpu.memory_space<vmem>>, vector<1x15xf32>
    %14 = vector.broadcast %13 : vector<1x15xf32> to vector<16x15xf32>
    %15 = arith.addf %12, %14 : vector<16x15xf32>
    %16 = arith.negf %15 : vector<16x15xf32>
    %17 = math.exp %16 : vector<16x15xf32>
    %cst_11 = arith.constant 1.000000e+00 : f32
    %18 = vector.broadcast %cst_11 : f32 to vector<16x15xf32>
    %19 = arith.addf %18, %17 : vector<16x15xf32>
    %20 = arith.divf %18, %19 : vector<16x15xf32>
    %c0_12 = arith.constant 0 : index
    %c0_13 = arith.constant 0 : index
    %21 = vector.load %arg6[%c0_12, %c0_13] : memref<15x25xf32, #tpu.memory_space<vmem>>, vector<15x25xf32>
    %cst_14 = arith.constant dense<0.000000e+00> : vector<16x25xf32>
    %22 = tpu.matmul %20, %21, %cst_14 {dimension_numbers = #tpu.dot_dimension_numbers<[1], [0], [0], [1], [0, 0, 1, 1], [], []>} : vector<16x15xf32>, vector<15x25xf32>, vector<16x25xf32> -> vector<16x25xf32>
    %c0_15 = arith.constant 0 : index
    %c0_16 = arith.constant 0 : index
    %23 = vector.load %arg7[%c0_15, %c0_16] : memref<1x25xf32, #tpu.memory_space<vmem>>, vector<1x25xf32>
    %24 = vector.broadcast %23 : vector<1x25xf32> to vector<16x25xf32>
    %25 = arith.addf %22, %24 : vector<16x25xf32>
    %26 = arith.negf %25 : vector<16x25xf32>
    %27 = math.exp %26 : vector<16x25xf32>
    %cst_17 = arith.constant 1.000000e+00 : f32
    %28 = vector.broadcast %cst_17 : f32 to vector<16x25xf32>
    %29 = arith.addf %28, %27 : vector<16x25xf32>
    %30 = arith.divf %28, %29 : vector<16x25xf32>
    %31 = arith.truncf %30 : vector<16x25xf32> to vector<16x25xbf16>
    %c0_18 = arith.constant 0 : index
    %c0_19 = arith.constant 0 : index
    %32 = vector.load %arg8[%c0_18, %c0_19] : memref<25x256xbf16, #tpu.memory_space<vmem>>, vector<25x256xbf16>
    %cst_20 = arith.constant dense<0.000000e+00> : vector<16x256xf32>
    %33 = tpu.matmul %31, %32, %cst_20 {dimension_numbers = #tpu.dot_dimension_numbers<[1], [0], [0], [1], [0, 0, 1, 1], [], []>} : vector<16x25xbf16>, vector<25x256xbf16>, vector<16x256xf32> -> vector<16x256xf32>
    %c0_21 = arith.constant 0 : index
    %c0_22 = arith.constant 0 : index
    %34 = vector.load %arg9[%c0_21, %c0_22] : memref<1x256xf32, #tpu.memory_space<vmem>>, vector<1x256xf32>
    %35 = vector.broadcast %34 : vector<1x256xf32> to vector<16x256xf32>
    %36 = arith.addf %33, %35 : vector<16x256xf32>
    %37 = arith.truncf %36 : vector<16x256xf32> to vector<16x256xbf16>
    %c0_23 = arith.constant 0 : index
    %c0_24 = arith.constant 0 : index
    %38 = vector.load %arg10[%c0_23, %c0_24] : memref<16x256xbf16, #tpu.memory_space<vmem>>, vector<16x256xbf16>
    tpu.vector_store %arg10[%c0_23, %c0_24], %37 {strides = array<i32>} : memref<16x256xbf16, #tpu.memory_space<vmem>>, vector<16x256xbf16>,
    return
  }
  func.func @transform_0(%arg0: i32) -> (i32, i32) {
    %c0_i32 = arith.constant 0 : i32
    %c0_i32_0 = arith.constant 0 : i32
    return %arg0, %c0_i32 : i32, i32
  }
  func.func @transform_1(%arg0: i32) -> (i32, i32) {
    %c0_i32 = arith.constant 0 : i32
    %c0_i32_0 = arith.constant 0 : i32
    %c0_i32_1 = arith.constant 0 : i32
    return %c0_i32, %c0_i32_0 : i32, i32
  }
  func.func @transform_2(%arg0: i32) -> (i32, i32) {
    %c0_i32 = arith.constant 0 : i32
    %c0_i32_0 = arith.constant 0 : i32
    %c0_i32_1 = arith.constant 0 : i32
    return %c0_i32, %c0_i32_0 : i32, i32
  }
  func.func @transform_3(%arg0: i32) -> (i32, i32) {
    %c0_i32 = arith.constant 0 : i32
    %c0_i32_0 = arith.constant 0 : i32
    %c0_i32_1 = arith.constant 0 : i32
    return %c0_i32, %c0_i32_0 : i32, i32
  }
  func.func @transform_4(%arg0: i32) -> (i32, i32) {
    %c0_i32 = arith.constant 0 : i32
    %c0_i32_0 = arith.constant 0 : i32
    %c0_i32_1 = arith.constant 0 : i32
    return %c0_i32, %c0_i32_0 : i32, i32
  }
  func.func @transform_5(%arg0: i32) -> (i32, i32) {
    %c0_i32 = arith.constant 0 : i32
    %c0_i32_0 = arith.constant 0 : i32
    %c0_i32_1 = arith.constant 0 : i32
    return %c0_i32, %c0_i32_0 : i32, i32
  }
  func.func @transform_6(%arg0: i32) -> (i32, i32) {
    %c0_i32 = arith.constant 0 : i32
    %c0_i32_0 = arith.constant 0 : i32
    %c0_i32_1 = arith.constant 0 : i32
    return %c0_i32, %c0_i32_0 : i32, i32
  }
  func.func @transform_7(%arg0: i32) -> (i32, i32) {
    %c0_i32 = arith.constant 0 : i32
    %c0_i32_0 = arith.constant 0 : i32
    %c0_i32_1 = arith.constant 0 : i32
    return %c0_i32, %c0_i32_0 : i32, i32
  }
  func.func @transform_8(%arg0: i32) -> (i32, i32) {
    %c0_i32 = arith.constant 0 : i32
    %c0_i32_0 = arith.constant 0 : i32
    %c0_i32_1 = arith.constant 0 : i32
    return %c0_i32, %c0_i32_0 : i32, i32
  }
  func.func @transform_9(%arg0: i32) -> (i32, i32) {
    %c0_i32 = arith.constant 0 : i32
    %c0_i32_0 = arith.constant 0 : i32
    return %arg0, %c0_i32 : i32, i32
  }
}

</mosaic_0001>

<bundles_post_ra>
// kernel: _lambda_.2
= control target key start
LH: loop header
LB: loop body
LE: loop exit
PB: predicated region body
PF: predicated region fallthrough
CT: control target
= control target key end

     0   :  { %s1514_s0 = inlined_call_operand.hbm [shape: bf16[256,25], index: 0, kind: input, shape index: {}]   ;;  %s1515_s1 = inlined_call_operand.vmem [shape: f32[1,25], index: 1, kind: input, shape index: {}]   ;;  %s1516_s2 = inlined_call_operand.vmem [shape: f32[25,15], index: 2, kind: input, shape index: {}]   ;;  %s1517_s3 = inlined_call_operand.vmem [shape: f32[1,15], index: 3, kind: input, shape index: {}]   ;;  %s1518_s4 = inlined_call_operand.vmem [shape: f32[15,25], index: 4, kind: input, shape index: {}]   ;;  %s1519_s5 = inlined_call_operand.vmem [shape: f32[1,25], index: 5, kind: input, shape index: {}]   ;;  %s1520_s6 = inlined_call_operand.vmem [shape: bf16[25,256], index: 6, kind: input, shape index: {}]   ;;  %s1521_s7 = inlined_call_operand.vmem [shape: f32[1,256], index: 7, kind: input, shape index: {}]   ;;  %s1522_s8 = inlined_call_operand.vmem [shape: bf16[32,250], index: 8, kind: input, shape index: {}]   ;;  %s1523_s9 = inlined_call_operand.<no memory space> [shape: bf16[], index: 9, kind: input, shape index: {}]   ;;  %s1524_s10 = inlined_call_operand.hbm [shape: bf16[32,256], index: 10, kind: output, shape index: {}]  }
   0x1   :  { %v15_v0 = vstv %s1523_s9 }
   0x2   :  { %v1356_v1 = vunpack.i.l.bf16 %v15_v0 }
   0x3   :  { %20 = vsyncpa [#allocation8], 0 }
   0x4   :  { %21 = vsyncpa [#allocation9], 0 }
   0x5   :  { %23 = vsyncpa [#allocation9 + $0x1], 0  ;;  %s1358_s15 = smov 0   ;;  %s1360_s16 = smov 0  }
   0x6   :  { %s1362_s17 = smov 0   ;;  %s1364_s18 = smov 0  }
   0x7 LB: > { %s1379_s9 = sadd.s32 4294967295, %s1290_s18   ;;  %s966_s19 = sadd.s32 4294967294, %s1290_s18   ;;  %s1290_s18 = sphi %s1364_s18, %s1530_s18   ;;  %s1286_s17 = sphi %s1362_s17, %s1529_s17   ;;  %s1282_s16 = sphi %s1360_s16, %s1528_s16   ;;  %s1278_s15 = sphi %s1358_s15, %s1527_s15  }
   0x8   : > { %s1383_s20 = sadd.s32 1, %s1290_s18   ;;  %s230_s21 = sadd.s32 1, %s1286_s17 }
   0x9   : > { %s227_s22 = ssub.s32 %s1290_s18, %s1383_s20  ;;  %p240_p0 = scmp.ne.s32.totalorder %s1286_s17, %s1282_s16 }
   0xa   : > { %p228_p1 = scmp.eq.s32.totalorder %s227_s22, 0  ;;  %p241_p2 = scmp.eq.s32.totalorder %s1379_s9, 1 }
   0xb   : > { %p246_p3 = scmp.ne.s32.totalorder %s1282_s16, %s1278_s15  ;;  %p247_p4 = scmp.eq.s32.totalorder %s966_s19, 1 }
   0xc   : > { %s1394_s23 = scalar_select %p228_p1, %s1286_s17, %s230_s21  }
   0xd   : > { %p1396_p5 = por %p241_p2, %p240_p0  ;;  %p1400_p6 = por %p247_p4, %p246_p3 }
   0xe   : > { %p967_p7 = scmp.ge.s32.totalorder %s1290_s18, 1  ;;  %p254_p8 = scmp.lt.s32.totalorder %s1290_s18, 3 }
   0xf   : > { %p1126_p9 = scmp.eq.s32.totalorder %s1379_s9, 0  ;;  %s265_s28 = sshll.u32 %s1514_s0, 4  ;;  %s266_s28 = int_to_ptr.hbm [resolvable:$true] %s265_s28 }
  0x10   : > { %p255_p10 = pnand %p967_p7, %p254_p8  ;;  %s1292_s29 = smov [#allocation7]  }
  0x11   : > { %s267_s30 = sshll.u32 %s1292_s29, 4  ;;  %s1293_s11 = smov 64   ;;  %s268_s30 = int_to_ptr.vmem [resolvable:$true] %s267_s30 }
  0x12   : > { %p1118_p11 = pneg %p255_p10  ;;  %s1294_s12 = smov 4  }
  0x13   : > { %314 = sbr.rel (%p255_p10) target bundleno = 697 (0x2b9), region = 56 }
  0x14   : > { %p1119_p12 = pnand %p1126_p9, %p1118_p11 }
  0x16   : > { %1121 = dma.hbm_to_vmem [thread:$0]  (!%p1119_p12), %s266_s28, 2048, %s268_s30, [#allocation8], %s1293_s11, %s1293_s11, %s1294_s12  }
  0x18   : > { %1269 = dma.done.wait (%p1126_p9), [#allocation8], 2048  }
  0x19   : > { %1271 = vsyncadd (%p1126_p9), [#allocation8], 4294965248  ;;  %s973_s13 = sshll.u32 %s1379_s9, 1  ;;  %v385_v2 = vlaneseq  ;;  %v1097_v4 = vld [vmem:[#allocation7 + $0x38] sm:$0xff]  ;;  %v1096_v7 = vld [vmem:[#allocation7 + $0x30] sm:$0xff]  ;;  %vm658_vm1 = vcmask 1040384  }
  0x1a   : > { %p353_p13 = scmp.lt.s32.totalorder %s973_s13, 3  ;;  %v1105_v5 = vld [vmem:[#allocation7 + $0x78] sm:$0xff]  ;;  %577 = vmatpush.bf16.msra.mxu0 %v1097_v4  ;;  %v1104_v8 = vld [vmem:[#allocation7 + $0x70] sm:$0xff]  ;;  %v1095_v9 = vld [vmem:[#allocation7 + $0x28] sm:$0xff]  ;;  %vm651_vm5 = vcmask 203776   ;;  %vm736_vm11 = vcmask 1046528  }
  0x1b   : > { %v386_v3 = vand.u32 127, %v385_v2  ;;  %591 = vmatpush.bf16.msra.mxu1 %v1105_v5  ;;  %v1103_v10 = vld [vmem:[#allocation7 + $0x68] sm:$0xff]  ;;  %v1094_v19 = vld [vmem:[#allocation7 + $0x20] sm:$0xff]  ;;  %v1093_v23 = vld [vmem:[#allocation7 + $0x18] sm:$0xff]  ;;  %vm729_vm15 = vcmask 121856   ;;  %s349_s26 = sand.u32 1, %s1282_s16  }
  0x1c   : > { %s1532_s13 = smov (!%p353_p13, %s973_s13), 3  ;;  %v1102_v20 = vld [vmem:[#allocation7 + $0x60] sm:$0xff]  ;;  %v1101_v24 = vld [vmem:[#allocation7 + $0x58] sm:$0xff]  ;;  %v1092_v25 = vld [vmem:[#allocation7 + $0x10] sm:$0xff]  ;;  %s972_s27 = sshll.u32 %s349_s26, 4 }
  0x1d   : > { %s1087_s14 = sshll.u32 %s1532_s13, 3  ;;  %v387_v6 = vadd.s32 128, %v386_v3  ;;  %v1100_v26 = vld [vmem:[#allocation7 + $0x50] sm:$0xff]  ;;  %v1091_v27 = vld [vmem:[#allocation7 + $0x8] sm:$0xff]  ;;  %v1090_v29 = vld [vmem:[#allocation7] sm:$0xff]  ;;  %s1111_s28 = sshll.u32 %s1379_s9, 4 }
  0x1e   : > { %s357_s22 = scalar_lea.vmem %s1522_s8, %s1087_s14  ;;  %578 = vmatpush.bf16.msra.mxu0 %v1096_v7  ;;  %v1099_v28 = vld [vmem:[#allocation7 + $0x48] sm:$0xff]  ;;  %v1098_v30 = vld [vmem:[#allocation7 + $0x40] sm:$0xff]  ;;  %v646_v37 = vld [vmem:[%s1516_s2 + $0x18] sm:$0x1]  ;;  %s888_s11 = scalar_lea.hbm %s1524_s10, %s1111_s28 }
  0x1f   : > { %v360_v11 = vld [vmem:[%s357_s22] sm:$0xf]  ;;  %v977_v12 = vld [vmem:[%s357_s22 + $0x8] sm:$0xf]  ;;  %vm388_vm0 = vcmp.lt.s32.totalorder %v387_v6, 250  ;;  %592 = vmatpush.bf16.msra.mxu1 %v1104_v8  ;;  %v645_v38 = vld [vmem:[%s1516_s2 + $0x10] sm:$0xff]  ;;  %1053 = vmatpush.msk.msra.mxu2 %vm658_vm1, %v646_v37 }
  0x20   : > { %371 = vst [vmem:[#allocation11] sm:$0xf] %v360_v11  ;;  %v976_v13 = vld [vmem:[%s357_s22 + $0x4] sm:$0xf]  ;;  %v978_v14 = vld [vmem:[%s357_s22 + $0xc] sm:$0xf] }
  0x21   : > { %408 = vst [vmem:[#allocation11 + $0x8] sm:$0xf] %v977_v12  ;;  %v383_v15 = vunpack.c.l.bf16 %v976_v13  ;;  %v420_v16 = vunpack.c.l.bf16 %v978_v14  ;;  %v644_v39 = vld [vmem:[%s1516_s2 + $0x8] sm:$0xff]  ;;  %675 = vmatpush.msra.mxu2 %v645_v38  ;;  %v643_v40 = vld [vmem:[%s1516_s2] sm:$0xff]  ;;  %s351_s12 = scalar_lea.vmem [#allocation10], %s972_s27  ;;  %s891_s14 = sshll.u32 %s888_s11, 4  ;;  %s892_s14 = int_to_ptr.hbm [resolvable:$true] %s891_s14 }
  0x22   : > { %579 = vmatpush.bf16.msra.mxu0 %v1095_v9  ;;  %v1167_v41 = vld [vmem:[%s1515_s1] ss:$0 sm:$0xff]  ;;  %v724_v13 = vld [vmem:[%s1518_s4 + $0x8] sm:$0x7f]  ;;  %s889_s13 = sshll.u32 %s351_s12, 4  ;;  %s876_s19 = scalar_lea.sflag [#allocation9], %s349_s26  ;;  %s890_s13 = int_to_ptr.vmem [resolvable:$true] %s889_s13 }
  0x23   : > { %v389_v17 = vsel %vm388_vm0, %v383_v15, %v1356_v1  ;;  %v426_v18 = vsel %vm388_vm0, %v420_v16, %v1356_v1  ;;  %593 = vmatpush.bf16.msra.mxu1 %v1103_v10  ;;  %676 = vmatpush.msra.mxu2 %v644_v39  ;;  %v723_v14 = vld [vmem:[%s1518_s4] sm:$0xff]  ;;  %s1238_s9 = sshra.s32 %s892_s14, 4  ;;  %s1244_s28 = scalar_lea.hbm %s1524_s10, 32  ;;  %s1239_s9 = int_to_ptr.hbm [resolvable:$true] %s1238_s9 }
  0x24   : > { %v391_v21 = vpack.c.bf16 0.0, %v389_v17  ;;  %v428_v22 = vpack.c.bf16 0.0, %v426_v18  ;;  %1058 = vmatpush.msk.msra.mxu3 %vm736_vm11, %v724_v13  ;;  %v1168_v15 = vld [vmem:[%s1517_s3] ss:$0 sm:$0xff]  ;;  %s1240_s21 = scalar_lea.hbm %s1239_s9, 16  ;;  %p1245_p3 = scmp.lt.s32.totalorder %s1239_s9, %s1524_s10 }
  0x25   : > { %677 = vmatpush.msra.mxu2 %v643_v40  ;;  %p1241_p0 = scmp.ne.s32.totalorder %s1239_s9, %s1240_s21  ;;  %p1246_p4 = scmp.lt.s32.totalorder %s1244_s28, %s1240_s21 }
  0x26   : > { %394 = vst [vmem:[#allocation11 + $0x4] sm:$0xf] %v391_v21  ;;  %580 = vmatpush.bf16.msra.mxu0 %v1094_v19  ;;  %755 = vmatpush.msra.mxu3 %v723_v14 }
  0x27   : > { %431 = vst [vmem:[#allocation11 + $0xc] sm:$0xf] %v428_v22  ;;  %594 = vmatpush.bf16.msra.mxu1 %v1102_v20  ;;  %v981_v31 = vld [vmem:[#allocation11] sm:$0xf]  ;;  %p1242_p1 = pnand %p1241_p0, %p1396_p5  ;;  %p1247_p7 = por %p1246_p4, %p1245_p3 }
  0x28   : > { %v1089_v32 = vld [vmem:[#allocation11 + $0x4] sm:$0xf0] }
  0x29   : > { %v982_v35 = vor.u32 %v1089_v32, %v981_v31  ;;  %p1243_p2 = pneg %p1242_p1 }
  0x2a   : > { %581 = vmatpush.bf16.msra.mxu0 %v1093_v23 }
  0x2b   : > { %595 = vmatpush.bf16.msra.mxu1 %v1101_v24  ;;  %p1248_p8 = pnand %p1247_p7, %p1243_p2 }
  0x2d   : > { %v1088_v33 = vld [vmem:[#allocation11 + $0x4] sm:$0xf] }
  0x2e   : > { %582 = vmatpush.bf16.msra.mxu0 %v1092_v25  ;;  %v983_v34 = vld [vmem:[#allocation11 + $0x8] sm:$0xf0] }
  0x2f   : > { %596 = vmatpush.bf16.msra.mxu1 %v1100_v26  ;;  %v986_v36 = vor.u32 %v1088_v33, %v983_v34 }
  0x32   : > { %583 = vmatpush.bf16.msra.mxu0 %v1091_v27 }
  0x33   : > { %597 = vmatpush.bf16.msra.mxu1 %v1099_v28 }
  0x36   : > { %584 = vmatpush.bf16.msra.mxu0 %v1090_v29 }
  0x37   : > { %598 = vmatpush.bf16.msra.mxu1 %v1098_v30 }
  0x39   : > { %585 = vmatmul.bf16.vlgmr.msra.gmra.mxu0 %v982_v35 }
  0x3a   : > { %599 = vmatmul.bf16.vlgmr.msra.gmra.mxu1 %v986_v36 }
  0xb6   : > { %v586_v42 = vpop.f32.mrf.mxu0 }
  0xb7   : > { %v600_v43 = vpop.f32.mrf.mxu1  ;;  %v587_v44 = vadd.f32 %v1167_v41, %v586_v42 }
  0xb9   : > { %v601_v45 = vadd.f32 %v600_v43, %v587_v44 }
  0xbb   : > { %v1051_v46 = vmul.f32 -1.442695, %v601_v45 }
  0xbd   : > { %1170 = vpow2.f32 %v1051_v46  ;;  %v1169_v46 = vld [vmem:[%s1519_s5] ss:$0 sm:$0xff] }
  0xbe   : > { %v588_v47 = vpop.f32.mrf.mxu0 }
  0xbf   : > { %v589_v48 = vadd.f32 %v1167_v41, %v588_v47  ;;  %v602_v49 = vpop.f32.mrf.mxu1  ;;  %v1073_v47 = vld [vmem:[%s1520_s6 + $0x10] sm:$0xf] }
  0xc1   : > { %v603_v50 = vadd.f32 %v602_v49, %v589_v48  ;;  %v1109_v48 = vld [vmem:[%s1520_s6 + $0x14] sm:$0x10] }
  0xc2   : > { %v1074_v49 = vor.u32 %v1109_v48, %v1073_v47 }
  0xc3   : > { %v1171_v51 = vpop.eup %1170  ;;  %v1052_v52 = vmul.f32 -1.442695, %v603_v50  ;;  %v1295_v50 = vmov 65535  }
  0xc4   : > { %v611_v53 = vadd.f32 1.0, %v1171_v51 }
  0xc5   : > { %1172 = vpow2.f32 %v1052_v52  ;;  %v1108_v52 = vld [vmem:[%s1520_s6 + $0x14] sm:$0xf] }
  0xc6   : > { %1174 = vrcp.f32 %v611_v53  ;;  %v624_v59 = vand.u32 2147483648, %v611_v53  ;;  %v622_v61 = vand.u32 2147483647, %v611_v53  ;;  %vm618_vm3 = vweird.f32 %v611_v53 }
  0xc8   : > { %v625_v0 = vor.u32 1.1754944e-38, %v624_v59  ;;  %vm623_vm6 = vcmp.eq.f32.partialorder %v622_v61, 8.507059e+37  ;;  %v1067_v61 = vld [vmem:[%s1520_s6 + $0x8] sm:$0xf0] }
  0xcb   : > { %v1173_v54 = vpop.eup %1172 }
  0xcc   : > { %v1175_v55 = vpop.eup %1174  ;;  %v612_v56 = vadd.f32 1.0, %v1173_v54 }
  0xcd   : > { %v614_v57 = vmul.f32 %v1175_v55, %v611_v53  ;;  %vm619_vm2 = vweird.f32 %v1175_v55  ;;  %v1075_v53 = vld [vmem:[%s1520_s6 + $0x18] sm:$0x10] }
  0xce   : > { %1176 = vrcp.f32 %v612_v56  ;;  %vm620_vm4 = vmor %vm618_vm3, %vm619_vm2  ;;  %v639_v6 = vand.u32 2147483648, %v612_v56  ;;  %v637_v8 = vand.u32 2147483647, %v612_v56  ;;  %vm633_vm8 = vweird.f32 %v612_v56 }
  0xcf   : > { %v615_v58 = vsub.f32 1.0, %v614_v57  ;;  %v1107_v57 = vld [vmem:[%s1520_s6 + $0x4] sm:$0xf0] }
  0xd0   : > { %v640_v10 = vor.u32 1.1754944e-38, %v639_v6  ;;  %vm638_vm10 = vcmp.eq.f32.partialorder %v637_v8, 8.507059e+37 }
  0xd1   : > { %v616_v60 = vmul.f32 %v1175_v55, %v615_v58 }
  0xd3   : > { %v617_v62 = vadd.f32 %v1175_v55, %v616_v60  ;;  %v1106_v60 = vld [vmem:[%s1520_s6 + $0x4] sm:$0xf] }
  0xd4   : > { %v1177_v63 = vpop.eup %1176 }
  0xd5   : > { %v621_v2 = vsel %vm620_vm4, %v1175_v55, %v617_v62  ;;  %v629_v3 = vmul.f32 %v1177_v63, %v612_v56  ;;  %vm634_vm7 = vweird.f32 %v1177_v63  ;;  %v1078_v55 = vor.u32 %v1108_v52, %v1075_v53  ;;  %v1065_v56 = vld [vmem:[%s1520_s6] sm:$0xf] }
  0xd6   : > { %v626_v4 = vsel %vm623_vm6, %v625_v0, %v621_v2  ;;  %vm635_vm9 = vmor %vm633_vm8, %vm634_vm7  ;;  %vm833_vm6 = vcmask 1043456   ;;  %vm834_vm7 = vcmask 1044480   ;;  %v1066_v0 = vor.u32 %v1107_v57, %v1065_v56 }
  0xd7   : > { %1054 = vmatmul.msk.f32.vlgmr.msra.gmra.mxu2 %vm651_vm5, %v626_v4  ;;  %v630_v5 = vsub.f32 1.0, %v629_v3  ;;  %v835_v51 = vsel %vm833_vm6, 4294967295, %v1295_v50  ;;  %v1070_v3 = vor.u32 %v1106_v60, %v1067_v61 }
  0xd8   : > { %v836_v54 = vsel %vm834_vm7, %v835_v51, 0 }
  0xd9   : > { %v631_v7 = vmul.f32 %v1177_v63, %v630_v5  ;;  %v838_v59 = vand.u32 %v1074_v49, %v836_v54 }
  0xdb   : > { %v632_v9 = vadd.f32 %v1177_v63, %v631_v7  ;;  %849 = vmatpush.bf16.msrb.mxu3 %v838_v59 }
  0xdd   : > { %v636_v11 = vsel %vm635_vm9, %v1177_v63, %v632_v9  ;;  %v841_v63 = vand.u32 %v1078_v55, %v836_v54 }
  0xde   : > { %v641_v12 = vsel %vm638_vm10, %v640_v10, %v636_v11 }
  0xdf   : > { %1055 = vmatmul.msk.f32.gmra.mxu2 %vm651_vm5, %v641_v12  ;;  %850 = vmatpush.bf16.msrb.mxu3 %v1066_v0 }
  0xe0   : > { %863 = vmatpush.bf16.msrb.mxu2 %v841_v63 }
  0xe4   : > { %864 = vmatpush.bf16.msrb.mxu2 %v1070_v3 }
 0x15a   : > { %v679_v16 = vpop.f32.mrf.mxu2 }
 0x15b   : > { %v680_v17 = vadd.f32 %v1168_v15, %v679_v16 }
 0x15d   : > { %v1056_v18 = vmul.f32 -1.442695, %v680_v17 }
 0x15f   : > { %1178 = vpow2.f32 %v1056_v18 }
 0x162   : > { %v682_v19 = vpop.f32.mrf.mxu2 }
 0x163   : > { %v683_v20 = vadd.f32 %v1168_v15, %v682_v19 }
 0x165   : > { %v1179_v21 = vpop.eup %1178  ;;  %v1057_v22 = vmul.f32 -1.442695, %v683_v20 }
 0x166   : > { %v691_v23 = vadd.f32 1.0, %v1179_v21 }
 0x167   : > { %1180 = vpow2.f32 %v1057_v22 }
 0x168   : > { %1182 = vrcp.f32 %v691_v23  ;;  %v704_v29 = vand.u32 2147483648, %v691_v23  ;;  %v702_v31 = vand.u32 2147483647, %v691_v23  ;;  %vm698_vm13 = vweird.f32 %v691_v23 }
 0x16a   : > { %v705_v34 = vor.u32 1.1754944e-38, %v704_v29  ;;  %vm703_vm0 = vcmp.eq.f32.partialorder %v702_v31, 8.507059e+37 }
 0x16d   : > { %v1181_v24 = vpop.eup %1180 }
 0x16e   : > { %v1183_v25 = vpop.eup %1182  ;;  %v692_v26 = vadd.f32 1.0, %v1181_v24 }
 0x16f   : > { %v694_v27 = vmul.f32 %v1183_v25, %v691_v23  ;;  %vm699_vm12 = vweird.f32 %v1183_v25 }
 0x170   : > { %1184 = vrcp.f32 %v692_v26  ;;  %vm700_vm14 = vmor %vm698_vm13, %vm699_vm12  ;;  %v719_v39 = vand.u32 2147483648, %v692_v26  ;;  %v717_v41 = vand.u32 2147483647, %v692_v26  ;;  %vm713_vm2 = vweird.f32 %v692_v26 }
 0x171   : > { %v695_v28 = vsub.f32 1.0, %v694_v27 }
 0x172   : > { %v720_v43 = vor.u32 1.1754944e-38, %v719_v39  ;;  %vm718_vm4 = vcmp.eq.f32.partialorder %v717_v41, 8.507059e+37 }
 0x173   : > { %v696_v30 = vmul.f32 %v1183_v25, %v695_v28 }
 0x175   : > { %v697_v32 = vadd.f32 %v1183_v25, %v696_v30 }
 0x176   : > { %v1185_v33 = vpop.eup %1184 }
 0x177   : > { %v701_v35 = vsel %vm700_vm14, %v1183_v25, %v697_v32  ;;  %v709_v36 = vmul.f32 %v1185_v33, %v692_v26  ;;  %vm714_vm1 = vweird.f32 %v1185_v33  ;;  %v806_v32 = vld [vmem:[%s1521_s7] sm:$0x3] }
 0x178   : > { %v706_v37 = vsel %vm703_vm0, %v705_v34, %v701_v35  ;;  %vm715_vm3 = vmor %vm713_vm2, %vm714_vm1  ;;  %v809_v34 = vperm.slane %v806_v32, 1 }
 0x179   : > { %1059 = vmatmul.msk.f32.vlgmr.msra.gmra.mxu3 %vm729_vm15, %v706_v37  ;;  %v710_v38 = vsub.f32 1.0, %v709_v36 }
 0x17b   : > { %v711_v40 = vmul.f32 %v1185_v33, %v710_v38 }
 0x17d   : > { %v712_v42 = vadd.f32 %v1185_v33, %v711_v40 }
 0x17f   : > { %v716_v44 = vsel %vm715_vm3, %v1185_v33, %v712_v42  ;;  %v808_v33 = vperm.slane %v806_v32, 0 }
 0x180   : > { %v721_v45 = vsel %vm718_vm4, %v720_v43, %v716_v44 }
 0x181   : > { %1060 = vmatmul.msk.f32.gmra.mxu3 %vm729_vm15, %v721_v45 }
 0x1fc   : > { %v757_v58 = vpop.f32.mrf.mxu3 }
 0x1fd   : > { %v758_v62 = vadd.f32 %v1169_v46, %v757_v58 }
 0x1ff   : > { %v1061_v2 = vmul.f32 -1.442695, %v758_v62 }
 0x201   : > { %1186 = vpow2.f32 %v1061_v2 }
 0x204   : > { %v760_v4 = vpop.f32.mrf.mxu3 }
 0x205   : > { %v761_v5 = vadd.f32 %v1169_v46, %v760_v4 }
 0x207   : > { %v1187_v6 = vpop.eup %1186  ;;  %v1062_v7 = vmul.f32 -1.442695, %v761_v5 }
 0x208   : > { %v769_v8 = vadd.f32 1.0, %v1187_v6 }
 0x209   : > { %1188 = vpow2.f32 %v1062_v7 }
 0x20a   : > { %1190 = vrcp.f32 %v769_v8  ;;  %vm776_vm9 = vweird.f32 %v769_v8  ;;  %v782_v19 = vand.u32 2147483648, %v769_v8  ;;  %v780_v21 = vand.u32 2147483647, %v769_v8 }
 0x20c   : > { %v783_v26 = vor.u32 1.1754944e-38, %v782_v19  ;;  %vm781_vm14 = vcmp.eq.f32.partialorder %v780_v21, 8.507059e+37 }
 0x20f   : > { %v1189_v9 = vpop.eup %1188 }
 0x210   : > { %v1191_v10 = vpop.eup %1190  ;;  %v770_v11 = vadd.f32 1.0, %v1189_v9 }
 0x211   : > { %v772_v12 = vmul.f32 %v1191_v10, %v769_v8  ;;  %vm777_vm8 = vweird.f32 %v1191_v10 }
 0x212   : > { %1192 = vrcp.f32 %v770_v11  ;;  %v797_v20 = vand.u32 2147483648, %v770_v11  ;;  %v795_v23 = vand.u32 2147483647, %v770_v11  ;;  %vm778_vm11 = vmor %vm776_vm9, %vm777_vm8  ;;  %vm791_vm12 = vweird.f32 %v770_v11 }
 0x213   : > { %v773_v13 = vsub.f32 1.0, %v772_v12 }
 0x214   : > { %v798_v27 = vor.u32 1.1754944e-38, %v797_v20  ;;  %vm796_vm15 = vcmp.eq.f32.partialorder %v795_v23, 8.507059e+37 }
 0x215   : > { %v774_v14 = vmul.f32 %v1191_v10, %v773_v13 }
 0x217   : > { %v775_v18 = vadd.f32 %v1191_v10, %v774_v14 }
 0x218   : > { %v1193_v15 = vpop.eup %1192 }
 0x219   : > { %v787_v16 = vmul.f32 %v1193_v15, %v770_v11  ;;  %vm792_vm10 = vweird.f32 %v1193_v15  ;;  %v779_v24 = vsel %vm778_vm11, %v1191_v10, %v775_v18 }
 0x21a   : > { %vm793_vm13 = vmor %vm791_vm12, %vm792_vm10  ;;  %v784_v29 = vsel %vm781_vm14, %v783_v26, %v779_v24 }
 0x21b   : > { %v788_v17 = vsub.f32 1.0, %v787_v16 }
 0x21d   : > { %v789_v22 = vmul.f32 %v1193_v15, %v788_v17 }
 0x21f   : > { %v790_v25 = vadd.f32 %v1193_v15, %v789_v22 }
 0x221   : > { %v794_v28 = vsel %vm793_vm13, %v1193_v15, %v790_v25 }
 0x222   : > { %v799_v30 = vsel %vm796_vm15, %v798_v27, %v794_v28 }
 0x223   : > { %v801_v31 = vpack.c.bf16 %v799_v30, %v784_v29 }
 0x225   : > { %1079 = vmatmul.msk.bf16.vlgmr.msrb.gmra.mxu3 %vm651_vm5, %v801_v31  ;;  %1080 = vmatmul.msk.bf16.vlgmr.msrb.gmra.mxu2 %vm651_vm5, %v801_v31 }
 0x2a8   : > { %v852_v35 = vpop.f32.mrf.mxu3  ;;  %v866_v36 = vpop.f32.mrf.mxu2 }
 0x2a9   : > { %v853_v37 = vadd.f32 %v852_v35, %v808_v33  ;;  %v867_v38 = vadd.f32 %v866_v36, %v809_v34 }
 0x2ab   : > { %v871_v39 = vpack.c.bf16 %v867_v38, %v853_v37 }
 0x2ad   : > { %873 = vst [vmem:[%s351_s12] sm:$0xff] %v871_v39 }
 0x2b0   : > { %v854_v40 = vpop.f32.mrf.mxu3  ;;  %v868_v41 = vpop.f32.mrf.mxu2 }
 0x2b1   : > { %v855_v42 = vadd.f32 %v854_v40, %v808_v33  ;;  %v869_v43 = vadd.f32 %v868_v41, %v809_v34 }
 0x2b3   : > { %v872_v44 = vpack.c.bf16 %v869_v43, %v855_v42 }
 0x2b5   : > { %874 = vst [vmem:[%s351_s12 + $0x8] sm:$0xff] %v872_v44 }
 0x2b6   : > { %1251 = shalt.err (!%p1248_p8)
}
 0x2b7   : > { %s1296_s26 = smov 128   ;;  %s1297_s11 = smov 8  }
 0x2b8   : > { %1116 = dma.vmem_to_hbm [thread:$0]  (%p1396_p5), %s890_s13, 256, %s892_s14, %s876_s19, %s1296_s26, %s1296_s26, %s1297_s11  }
 0x2b9 PF: > { %p1128_p9 = scmp.ge.s32.totalorder %s1290_s18, 2  ;;  %s906_s12 = sand.u32 1, %s1278_s15  }
 0x2ba   : > { %s907_s22 = scalar_lea.sflag [#allocation9], %s906_s12 }
 0x2bb   : > { %p1123_p10 = pnand %p1128_p9, %p1400_p6 }
 0x2bd   : > { %p1124_p11 = pneg %p1123_p10 }
 0x2bf   : > { %1273 = dma.done.wait (%p1124_p11), %s907_s22, 256  }
 0x2c0   : > { %1275 = vsyncadd (%p1124_p11), %s907_s22, 4294967040  ;;  %p26_p12 = scmp.ge.s32.totalorder %s1383_s20, 4   ;;  %s1527_s15 = smov %s1282_s16 }
 0x2c1   : > { %s1528_s16 = smov %s1286_s17  ;;  %s1529_s17 = smov %s1394_s23 }
 0x2c2   : > { %s1530_s18 = smov %s1383_s20  ;;  %28 = sbr.rel (!%p26_p12) target bundleno = 7 (0x7), region = 102 }
 0x2c7   :  { %913 = vsyncpa [#allocation8], 1 }
 0x2c8   :  { %915 = vsyncpa [#allocation8 + $0x1], 1 }
 0x2c9   :  { %916 = vsyncpa [#allocation9], 1 }
 0x2ca   :  { %918 = vsyncpa [#allocation9 + $0x1], 1 }

</bundles_post_ra>
